<compile_context>
chip_gen: v7x
topology: tpu7x:2x2x1
jax: 0.10.0
libtpu: 0.0.40
codegen_flags: <defaults>
</compile_context>

<pallas_src>
import functools

import jax
import jax.numpy as jnp
from jax.experimental import pallas as pl
from jax.experimental.pallas import tpu as pltpu


def _static_int_pow(x, gamma):
    """x ** gamma with static gamma; integer gamma -> repeated VPU multiplies."""
    g = float(gamma)
    if g == int(g) and g >= 0:
        gi = int(g)
        if gi == 0:
            return jnp.ones_like(x)
        r = x
        for _ in range(gi - 1):
            r = r * x
        return r
    return x ** g  # fractional gamma: fall back to pow (EUP)


def _focal_loss_kernel(x_ref, t_ref, o_ref, *, alpha, gamma, n_total, tn):
    i = pl.program_id(0)

    # Row-validity mask for a (possibly partial) last tile. Padded rows are NOT
    # pre-masked on load; garbage flows through the row-local math and is
    # dropped from fl below (saves one full-width select per tile).
    row = jax.lax.broadcasted_iota(jnp.int32, (tn, 1), 0) + i * tn           # [TN,1]
    row_valid = row < n_total                                                # [TN,1]

    # Load native dtype, cast to f32 in-kernel (keeps HBM traffic at bf16
    # width when callers pass bf16 logits).
    x = x_ref[...].astype(jnp.float32)                                       # [TN,C]
    t = t_ref[...]                                                           # [TN,1] i32

    # Numerically stable softmax pieces along the class (lane) axis.
    m = jnp.max(x, axis=-1, keepdims=True)                                   # [TN,1]
    z = x - m                                                                # [TN,C]
    exp_z = jnp.exp(z)                                                       # per-element EUP
    sum_exp = jnp.sum(exp_z, axis=-1, keepdims=True)                         # [TN,1]
    lse = jnp.log(sum_exp)                                                   # [TN,1]

    # One-hot select of the target logit (select + reduce; no lane gather on TPU).
    col = jax.lax.broadcasted_iota(jnp.int32, z.shape, 1)                    # [TN,C]
    z_t = jnp.sum(jnp.where(col == t, z, 0.0), axis=-1, keepdims=True)       # [TN,1]

    ce = lse - z_t                          # = -log_softmax[target]
    pt = jnp.exp(z_t - lse)                 # = exp(-ce); [TN,1] EUP op (replaces the
                                            #   old full-width exp_t select + reduce)
    one_m_pt = jnp.maximum(1.0 - pt, 0.0)   # clamp ulp-negative values
    fl = _static_int_pow(one_m_pt, gamma) * ce
    if float(alpha) != 1.0:
        fl = fl * jnp.float32(alpha)
    fl = jnp.where(row_valid, fl, 0.0)      # drop padded rows from the mean

    # Per-tile partial sum, broadcast over a lane-dense (1,8,128) output block.
    # No cross-step state -> the batch axis can be "parallel" (megacore on v7x).
    o_ref[...] = jnp.broadcast_to(jnp.sum(fl), o_ref.shape)


def _vmem_plan():
    """(target block bytes, vmem_limit_bytes), generation-aware when queryable."""
    try:
        info = pltpu.get_tpu_info()
        cap = int(getattr(info, "vmem_capacity_bytes", 0))
    except Exception:
        cap = 0
    if cap >= 100 * 1024 * 1024:
        # v5e / v6e: 128 MiB physical VMEM -> larger blocks, higher limit.
        return 12 * 1024 * 1024, 80 * 1024 * 1024
    # v7x (64 MiB physical VMEM) or unknown: conservative but still ~8 MiB
    # blocks (2x double-buffered logits + targets + output << 48 MiB).
    return 8 * 1024 * 1024, 48 * 1024 * 1024


def _pick_block_rows(n, c, itemsize, target_bytes):
    # Round the row count to the dtype's sublane tile (8 rows for f32, 16 for
    # bf16) so VMEM packing and DMA stay dense.
    sublane = max(8, 32 // max(1, itemsize))
    if n <= sublane:
        return n
    tn = (target_bytes // max(1, c * itemsize)) // sublane * sublane
    tn = max(sublane, tn)
    tn = min(tn, (n // sublane) * sublane)
    return int(tn)


def focal_loss(inputs, targets, *, alpha=1.0, gamma=2.0, block_rows=None):
    """Pallas TPU focal loss. inputs: [N, C] logits (f32/bf16), targets: [N] int."""
    # TODO(synk): for small class counts (C << 128), pack 128//C rows per vreg in
    # the wrapper (reshape (N,C)->(N/k, k*C)) with segmented row reductions to
    # avoid wasting (1 - C/128) of every lane; tiny N*C should skip Pallas.
    n, c = inputs.shape
    t2d = targets.astype(jnp.int32).reshape(n, 1)
    itemsize = inputs.dtype.itemsize
    target_bytes, vmem_limit = _vmem_plan()
    tn = int(block_rows) if block_rows is not None else _pick_block_rows(
        n, c, itemsize, target_bytes)
    grid = pl.cdiv(n, tn)

    kernel = functools.partial(
        _focal_loss_kernel,
        alpha=float(alpha), gamma=float(gamma), n_total=n, tn=tn,
    )

    partials = pl.pallas_call(
        kernel,
        out_shape=jax.ShapeDtypeStruct((grid, 8, 128), jnp.float32),
        grid_spec=pltpu.PrefetchScalarGridSpec(
            num_scalar_prefetch=0,
            grid=(grid,),
            in_specs=[
                pl.BlockSpec((tn, c), lambda i: (i, 0)),   # logits tile
                pl.BlockSpec((tn, 1), lambda i: (i, 0)),   # target ids tile
            ],
            out_specs=pl.BlockSpec((1, 8, 128), lambda i: (i, 0, 0)),
        ),
        compiler_params=pltpu.CompilerParams(
            dimension_semantics=("parallel",),   # no cross-step state -> megacore OK
            vmem_limit_bytes=vmem_limit,
        ),
        cost_estimate=pl.CostEstimate(
            flops=7 * n * c,
            transcendentals=n * c + 2 * n,
            bytes_accessed=n * c * itemsize + n * 4 + grid * 8 * 128 * 4,
        ),
    )(inputs, t2d)

    # Tiny final reduction + mean outside the kernel.
    return jnp.sum(partials[:, 0, 0]) / jnp.float32(n)


def _focal_loss_ref(inputs, targets, *, alpha=1.0, gamma=2.0):
    # Pure-JAX reference (same math) for a quick sanity check.
    logp = jax.nn.log_softmax(inputs.astype(jnp.float32), axis=-1)
    ce = -jnp.take_along_axis(logp, targets.astype(jnp.int32)[:, None], axis=-1)[:, 0]
    pt = jnp.exp(-ce)
    return jnp.mean(alpha * (1.0 - pt) ** gamma * ce)


if __name__ == "__main__":
    key = jax.random.PRNGKey(0)
    k_x, k_t = jax.random.split(key)

    # Small shapes consistent with the module: batch=8, classes=32.
    N, C = 8, 32
    inputs = jax.random.normal(k_x, (N, C), dtype=jnp.float32)
    targets = jax.random.randint(k_t, (N,), 0, C, dtype=jnp.int32)
    out = jax.block_until_ready(focal_loss(inputs, targets, alpha=1.0, gamma=2.0))
    ref = _focal_loss_ref(inputs, targets, alpha=1.0, gamma=2.0)
    assert jnp.allclose(out, ref, rtol=1e-5, atol=1e-5), (out, ref)

    # Multi-tile partial-sum path + partial-last-tile row masking (f32, tn=8).
    N2, C2 = 13, 32
    k_x2, k_t2 = jax.random.split(k_t)
    inputs2 = jax.random.normal(k_x2, (N2, C2), dtype=jnp.float32)
    targets2 = jax.random.randint(k_t2, (N2,), 0, C2, dtype=jnp.int32)
    out2 = jax.block_until_ready(
        focal_loss(inputs2, targets2, alpha=1.0, gamma=2.0, block_rows=8)
    )
    ref2 = _focal_loss_ref(inputs2, targets2, alpha=1.0, gamma=2.0)
    assert jnp.allclose(out2, ref2, rtol=1e-5, atol=1e-5), (out2, ref2)

    # bf16 logits: 16-row sublane tiles, partial last tile, alpha != 1.
    N3, C3 = 24, 32
    k_x3, k_t3 = jax.random.split(k_t2)
    inputs3 = jax.random.normal(k_x3, (N3, C3), dtype=jnp.bfloat16)
    targets3 = jax.random.randint(k_t3, (N3,), 0, C3, dtype=jnp.int32)
    out3 = jax.block_until_ready(focal_loss(inputs3, targets3, alpha=0.25, gamma=2.0))
    ref3 = _focal_loss_ref(inputs3, targets3, alpha=0.25, gamma=2.0)
    assert jnp.allclose(out3, ref3, rtol=1e-5, atol=1e-5), (out3, ref3)

    print("KERNEL_OK")
</pallas_src>

<mosaic_0001>
module attributes {stable_mosaic.version = 11 : i64} {
  func.func @_focal_loss_kernel(%arg0: i32, %arg1: memref<8x32xf32, #tpu.memory_space<vmem>>, %arg2: memref<8x1xi32, #tpu.memory_space<vmem>>, %arg3: memref<1x8x128xf32, #tpu.memory_space<vmem>>) attributes {dimension_semantics = [#tpu.dimension_semantics<parallel>], iteration_bounds = array<i64: 1>, scalar_prefetch = 0 : i64, scratch_operands = 0 : i64, tpu.core_type = #tpu.core_type<tc>, window_params = [{transform_indices = @transform_0, window_bounds = array<i64: 8, 32>}, {transform_indices = @transform_1, window_bounds = array<i64: 8, 1>}, {transform_indices = @transform_2, window_bounds = array<i64: 1, 8, 128>}]} {
    %0 = tpu.iota {dimensions = array<i32: 0>} : vector<8x1xi32>
    %c8_i32 = arith.constant 8 : i32
    %1 = arith.muli %arg0, %c8_i32 : i32
    %2 = vector.broadcast %1 : i32 to vector<8x1xi32>
    %3 = arith.addi %0, %2 : vector<8x1xi32>
    %c8_i32_0 = arith.constant 8 : i32
    %4 = vector.broadcast %c8_i32_0 : i32 to vector<8x1xi32>
    %5 = arith.cmpi slt, %3, %4 : vector<8x1xi32>
    %c0 = arith.constant 0 : index
    %c0_1 = arith.constant 0 : index
    %6 = vector.load %arg1[%c0, %c0_1] : memref<8x32xf32, #tpu.memory_space<vmem>>, vector<8x32xf32>
    %c0_2 = arith.constant 0 : index
    %c0_3 = arith.constant 0 : index
    %7 = vector.load %arg2[%c0_2, %c0_3] : memref<8x1xi32, #tpu.memory_space<vmem>>, vector<8x1xi32>
    %cst = arith.constant dense<0xFF800000> : vector<8xf32>
    %8 = vector.multi_reduction <maximumf>, %6, %cst [1] : vector<8x32xf32> to vector<8xf32>
    %9 = vector.shape_cast %8 : vector<8xf32> to vector<8x1xf32>
    %10 = vector.broadcast %9 : vector<8x1xf32> to vector<8x32xf32>
    %11 = arith.subf %6, %10 : vector<8x32xf32>
    %12 = math.exp %11 : vector<8x32xf32>
    %cst_4 = arith.constant dense<0.000000e+00> : vector<8xf32>
    %13 = vector.multi_reduction <add>, %12, %cst_4 [1] : vector<8x32xf32> to vector<8xf32>
    %14 = vector.shape_cast %13 : vector<8xf32> to vector<8x1xf32>
    %15 = math.log %14 : vector<8x1xf32>
    %16 = tpu.iota {dimensions = array<i32: 1>} : vector<8x32xi32>
    %17 = vector.broadcast %7 : vector<8x1xi32> to vector<8x32xi32>
    %18 = arith.cmpi eq, %16, %17 : vector<8x32xi32>
    %cst_5 = arith.constant 0.000000e+00 : f32
    %19 = vector.broadcast %cst_5 : f32 to vector<8x32xf32>
    %20 = arith.select %18, %11, %19 : vector<8x32xi1>, vector<8x32xf32>
    %cst_6 = arith.constant dense<0.000000e+00> : vector<8xf32>
    %21 = vector.multi_reduction <add>, %20, %cst_6 [1] : vector<8x32xf32> to vector<8xf32>
    %22 = vector.shape_cast %21 : vector<8xf32> to vector<8x1xf32>
    %23 = arith.subf %15, %22 : vector<8x1xf32>
    %24 = arith.subf %22, %15 : vector<8x1xf32>
    %25 = math.exp %24 : vector<8x1xf32>
    %cst_7 = arith.constant 1.000000e+00 : f32
    %26 = vector.broadcast %cst_7 : f32 to vector<8x1xf32>
    %27 = arith.subf %26, %25 : vector<8x1xf32>
    %cst_8 = arith.constant 0.000000e+00 : f32
    %28 = vector.broadcast %cst_8 : f32 to vector<8x1xf32>
    %29 = arith.maximumf %27, %28 : vector<8x1xf32>
    %30 = arith.mulf %29, %29 : vector<8x1xf32>
    %31 = arith.mulf %30, %23 : vector<8x1xf32>
    %cst_9 = arith.constant 0.000000e+00 : f32
    %32 = vector.broadcast %cst_9 : f32 to vector<8x1xf32>
    %33 = arith.select %5, %31, %32 : vector<8x1xi1>, vector<8x1xf32>
    %34 = vector.shape_cast %33 : vector<8x1xf32> to vector<1x8x1xf32>
    %cst_10 = arith.constant dense<0.000000e+00> : vector<1xf32>
    %35 = vector.multi_reduction <add>, %34, %cst_10 [1, 2] : vector<1x8x1xf32> to vector<1xf32>
    %36 = vector.shape_cast %35 : vector<1xf32> to vector<1x1x1xf32>
    %37 = vector.extract %36[0, 0, 0] : f32 from vector<1x1x1xf32>
    %38 = vector.broadcast %37 : f32 to vector<1x8x128xf32>
    %c0_11 = arith.constant 0 : index
    %c0_12 = arith.constant 0 : index
    %c0_13 = arith.constant 0 : index
    %39 = vector.load %arg3[%c0_11, %c0_12, %c0_13] : memref<1x8x128xf32, #tpu.memory_space<vmem>>, vector<1x8x128xf32>
    tpu.vector_store %arg3[%c0_11, %c0_12, %c0_13], %38 {strides = array<i32>} : memref<1x8x128xf32, #tpu.memory_space<vmem>>, vector<1x8x128xf32>,
    return
  }
  func.func @transform_0(%arg0: i32) -> (i32, i32) {
    %c0_i32 = arith.constant 0 : i32
    %c0_i32_0 = arith.constant 0 : i32
    return %arg0, %c0_i32 : i32, i32
  }
  func.func @transform_1(%arg0: i32) -> (i32, i32) {
    %c0_i32 = arith.constant 0 : i32
    %c0_i32_0 = arith.constant 0 : i32
    return %arg0, %c0_i32 : i32, i32
  }
  func.func @transform_2(%arg0: i32) -> (i32, i32, i32) {
    %c0_i32 = arith.constant 0 : i32
    %c0_i32_0 = arith.constant 0 : i32
    %c0_i32_1 = arith.constant 0 : i32
    return %arg0, %c0_i32, %c0_i32_0 : i32, i32, i32
  }
}

</mosaic_0001>

<bundles_post_ra>
// kernel: tpu_custom_call.1
= control target key start
LH: loop header
LB: loop body
LE: loop exit
PB: predicated region body
PF: predicated region fallthrough
CT: control target
= control target key end

     0   :  { %vm20_vm0 = vcmask 261120   ;;  %s151_s0 = inlined_call_operand.vmem [shape: f32[8,32], index: 0, kind: input, shape index: {}]   ;;  %s152_s1 = inlined_call_operand.vmem [shape: s32[8,1], index: 1, kind: input, shape index: {}]   ;;  %s153_s2 = inlined_call_operand.hbm [shape: f32[1,8,128], index: 2, kind: output, shape index: {}]  }
   0x1   :  { %v18_v0 = vld [vmem:[%s151_s0] sm:$0xff] }
   0x2   :  { %7 = vsyncpa [#allocation3], 0  ;;  %v21_v1 = vsel %vm20_vm0, %v18_v0, -inf  ;;  %v113_v2 = vmov 0   ;;  %v19_v3 = vld [vmem:[%s152_s1] sm:$0xff]  ;;  %v32_v7 = vlaneseq  ;;  %vm51_vm2 = vcmask 7168  }
   0x3   :  { %82 = vset.pattern.permute.xlu0 %v113_v2  ;;  %s114_s0 = smov [#allocation2]  }
   0x4   :  { %22 = vmax.xlane.f32.xlu0 %v21_v1  ;;  %v33_v8 = vand.u32 127, %v32_v7  ;;  %s70_s1 = sshll.u32 %s114_s0, 4  ;;  %s71_s1 = int_to_ptr.vmem [resolvable:$true] %s70_s1 }
   0x5   :  { %s89_s14 = scalar_lea.vmem %s71_s1, 128  ;;  %p94_p1 = scmp.lt.s32.totalorder %s71_s1, %s71_s1 }
   0x6   :  { %p90_p0 = scmp.ne.s32.totalorder %s71_s1, %s89_s14  ;;  %p95_p2 = scmp.lt.s32.totalorder %s89_s14, %s89_s14 }
   0x8   :  { %p96_p3 = por %p95_p2, %p94_p1 }
   0xa   :  { %p97_p4 = pnand %p96_p3, %p90_p0 }
  0x1a   :  { %35 = vperm.xlu0 %82, %v19_v3  }
  0x91   :  { %v23_v4 = vpop.xlane.xlu0 %22 }
  0x92   :  { %v24_v5 = vsub.f32 %v18_v0, %v23_v4 }
  0x94   :  { %v25_v6 = vmul.f32 1.442695, %v24_v5 }
  0x96   :  { %83 = vpow2.f32 %v25_v6 }
  0x99   :  { %v36_v9 = vpop.permute.xlu0 %35 }
  0x9a   :  { %vm37_vm1 = vcmp.eq.s32.totalorder %v33_v8, %v36_v9 }
  0x9b   :  { %v38_v12 = vsel %vm37_vm1, %v24_v5, 0.0 }
  0x9c   :  { %v39_v13 = vsel %vm20_vm0, %v38_v12, 0.0 }
  0xa0   :  { %v84_v10 = vpop.eup %83 }
  0xa1   :  { %v27_v11 = vsel %vm20_vm0, %v84_v10, 0.0 }
  0xa2   :  { %28 = vadd.xlane.f32.xlu1 %v27_v11 }
  0xa6   :  { %40 = vadd.xlane.f32.xlu1 %v39_v13 }
 0x12f   :  { %v29_v14 = vpop.xlane.xlu1 %28 }
 0x130   :  { %85 = vlog2.f32 %v29_v14 }
 0x133   :  { %v41_v17 = vpop.xlane.xlu1 %40 }
 0x13a   :  { %v86_v15 = vpop.eup %85 }
 0x13b   :  { %v31_v16 = vmul.f32 0.6931472, %v86_v15 }
 0x13d   :  { %v43_v18 = vsub.f32 %v41_v17, %v31_v16  ;;  %v42_v23 = vsub.f32 %v31_v16, %v41_v17 }
 0x13f   :  { %v44_v19 = vmul.f32 1.442695, %v43_v18 }
 0x141   :  { %87 = vpow2.f32 %v44_v19 }
 0x14b   :  { %v88_v20 = vpop.eup %87 }
 0x14c   :  { %v46_v21 = vsub.f32 1.0, %v88_v20 }
 0x14e   :  { %v47_v22 = vmax.f32 %v46_v21, 0.0 }
 0x150   :  { %v48_v24 = vmul.f32 %v47_v22, %v47_v22 }
 0x152   :  { %v49_v25 = vmul.f32 %v48_v24, %v42_v23 }
 0x154   :  { %v52_v26 = vsel %vm51_vm2, %v49_v25, 0.0 }
 0x155   :  { %53 = vadd.xlane.f32.xlu1 %v52_v26 }
 0x1e2   :  { %v54_v27 = vpop.xlane.xlu1 %53 }
 0x1e3   :  { %v55_v28 = vrot.slane %v54_v27, 4 }
 0x1e5   :  { %v56_v29 = vadd.f32 %v55_v28, %v54_v27 }
 0x1e7   :  { %v57_v30 = vrot.slane %v56_v29, 2 }
 0x1e9   :  { %v58_v31 = vadd.f32 %v57_v30, %v56_v29 }
 0x1eb   :  { %v59_v32 = vrot.slane %v58_v31, 1 }
 0x1ed   :  { %v60_v33 = vadd.f32 %v59_v32, %v58_v31 }
 0x1ef   :  { %78 = vpush %v60_v33 }
 0x220   :  { %s79_s13 = spop %78 }
 0x221   :  { %v62_v34 = vstv %s79_s13 }
 0x222   :  { %63 = vst [vmem:[#allocation2] sm:$0xff] %v62_v34 }
 0x223   :  { %100 = shalt.err (!%p97_p4)
}
 0x224   :  { %s101_s17 = scalar_lea.hbm %s153_s2, 128 }
 0x225   :  { %p102_p5 = scmp.ne.s32.totalorder %s153_s2, %s101_s17  ;;  %p105_p6 = scmp.lt.u32.totalorder %s101_s17, %s153_s2 }
 0x227   :  { %p107_p7 = pnand %p105_p6, %p102_p5 }
 0x229   :  { %110 = shalt.err (!%p107_p7)
}
 0x22a   :  { %73 = dma.vmem_to_hbm [thread:$0]  %s71_s1, 128, %s153_s2, [#allocation3]  }
 0x22b   :  { %111 = dma.done.wait [#allocation3], 128  }
 0x22c   :  { %112 = vsyncadd [#allocation3], 4294967168 }
 0x22d   :  { %77 = vsyncpa [#allocation3], 1 }

</bundles_post_ra>
